<compile_context>
chip_gen: v5e
topology: v5e:2x2
jax: 0.10.0
libtpu: 0.0.40
codegen_flags: <defaults>
</compile_context>

<pallas_src>
import math
import functools

import jax
import jax.numpy as jnp
from jax import lax
from jax.experimental import pallas as pl
from jax.experimental.pallas import tpu as pltpu


MASK_VALUE = -1e30


# ---------------------------------------------------------------------------
# Tiled linear kernels (fused QKV projection and output projection)
# ---------------------------------------------------------------------------
def _matmul_kernel_acc(x_ref, w_ref, o_ref, acc_ref):
    @pl.when(pl.program_id(2) == 0)
    def _():
        acc_ref[...] = jnp.zeros_like(acc_ref)

    # Cast of the activation fused into the kernel (no-op if already bf16).
    acc_ref[...] += jnp.dot(x_ref[...].astype(jnp.bfloat16), w_ref[...],
                            preferred_element_type=jnp.float32)

    @pl.when(pl.program_id(2) == pl.num_programs(2) - 1)
    def _():
        o_ref[...] = acc_ref[...].astype(o_ref.dtype)


def _matmul_kernel_single(x_ref, w_ref, o_ref):
    # Specialization for K-grid == 1: no fp32 scratch round-trip, no pl.when.
    o_ref[...] = jnp.dot(x_ref[...].astype(jnp.bfloat16), w_ref[...],
                         preferred_element_type=jnp.float32).astype(o_ref.dtype)


def pallas_matmul(x, w_t, *, out_dtype=jnp.bfloat16, tm=256, tn=256, tk=512):
    """x: (M, K) fp32/bf16, w_t: (K, N) bf16 pre-transposed weight -> (M, N)."""
    M, K = x.shape
    K2, N = w_t.shape
    assert K == K2
    tm, tn, tk = min(tm, M), min(tn, N), min(tk, K)
    assert M % tm == 0 and N % tn == 0 and K % tk == 0, (M, N, K, tm, tn, tk)
    grid = (M // tm, N // tn, K // tk)
    if grid[2] == 1:
        kernel, scratch = _matmul_kernel_single, []
    else:
        kernel, scratch = _matmul_kernel_acc, [pltpu.VMEM((tm, tn), jnp.float32)]
    return pl.pallas_call(
        kernel,
        out_shape=jax.ShapeDtypeStruct((M, N), out_dtype),
        grid_spec=pltpu.PrefetchScalarGridSpec(
            num_scalar_prefetch=0,
            grid=grid,
            in_specs=[pl.BlockSpec((tm, tk), lambda i, j, k: (i, k)),
                      pl.BlockSpec((tk, tn), lambda i, j, k: (k, j))],
            out_specs=pl.BlockSpec((tm, tn), lambda i, j, k: (i, j)),
            scratch_shapes=scratch),
        compiler_params=pltpu.CompilerParams(
            dimension_semantics=("parallel", "parallel", "arbitrary"),
            vmem_limit_bytes=48 * 1024 * 1024),
    )(x, w_t)


# ---------------------------------------------------------------------------
# Flash attention kernel: GQA-grouped, causal, Q-RoPE in-kernel,
# Q read straight from the fused QKV buffer, token-major lane-dense output.
# ---------------------------------------------------------------------------
def _flash_attn_kernel(q_ref, k_ref, v_ref, cq_ref, sq_ref, o_ref,
                       qe_sc, m_sc, l_sc, acc_sc,
                       *, scale, tq, tk, n_rep, head_dim, causal):
    qi = pl.program_id(2)
    ki = pl.program_id(3)
    nk = pl.num_programs(3)
    D = head_dim

    @pl.when(ki == 0)
    def _init():
        # Q block arrives as (tq, n_rep*D) token-major straight from the QKV
        # buffer.  Rearrange once per q block to (n_rep*tq, D) rows for the
        # MXU (lane slices + sublane concat; no HBM transpose), apply RoPE
        # (rotate_half via XLU roll, sign folded into cached sin) and fold in
        # 1/sqrt(D).  Reused across every KV step.
        q2 = q_ref[...].astype(jnp.float32)                       # (tq, n_rep*D)
        if n_rep > 1:
            q = jnp.concatenate(
                [q2[:, r * D:(r + 1) * D] for r in range(n_rep)], axis=0)
            cos = jnp.tile(cq_ref[...], (n_rep, 1))
            sin = jnp.tile(sq_ref[...], (n_rep, 1))                # sign-folded
        else:
            q, cos, sin = q2, cq_ref[...], sq_ref[...]
        q_rot = pltpu.roll(q, shift=D // 2, axis=1)
        qe_sc[...] = ((q * cos + q_rot * sin) * scale).astype(jnp.bfloat16)
        # NOTE: MASK_VALUE (not -inf) init is safe because the first visited
        # KV block (ki=0) always has unmasked columns for a pure causal mask
        # starting at position 0.  Revisit if padding masks / KV cache added.
        m_sc[...] = jnp.full_like(m_sc, MASK_VALUE)
        l_sc[...] = jnp.zeros_like(l_sc)
        acc_sc[...] = jnp.zeros_like(acc_sc)

    def _compute():
        k_e = k_ref[...]                                           # roped K, bf16
        s = lax.dot_general(qe_sc[...], k_e, (((1,), (1,)), ((), ())),
                            preferred_element_type=jnp.float32)    # (n_rep*tq, tk)
        if causal:
            row = qi * tq + (lax.broadcasted_iota(jnp.int32, s.shape, 0) % tq)
            col = ki * tk + lax.broadcasted_iota(jnp.int32, s.shape, 1)
            s = jnp.where(row >= col, s, MASK_VALUE)

        m_prev = m_sc[...]
        m_new = jnp.maximum(m_prev, jnp.max(s, axis=-1, keepdims=True))
        alpha = jnp.exp(m_prev - m_new)
        p = jnp.exp(s - m_new)                                     # fp32
        l_sc[...] = alpha * l_sc[...] + jnp.sum(p, axis=-1, keepdims=True)
        acc_sc[...] = alpha * acc_sc[...] + jnp.dot(
            p.astype(jnp.bfloat16), v_ref[...],
            preferred_element_type=jnp.float32)
        m_sc[...] = m_new

    if causal:
        # Fully-masked KV blocks: compute skipped here, and their K/V DMA is
        # avoided by the clamped index_map in the wrapper.
        pl.when(ki * tk < (qi + 1) * tq)(_compute)
    else:
        _compute()

    @pl.when(ki == nk - 1)
    def _finalize():
        inv = pl.reciprocal(l_sc[...], approx=True)
        out = acc_sc[...] * inv                                    # (n_rep*tq, D)
        if n_rep > 1:
            # (n_rep*tq, D) -> lane-dense (tq, n_rep*D) token-major block.
            out = jnp.concatenate(
                [out[r * tq:(r + 1) * tq, :] for r in range(n_rep)], axis=1)
        o_ref[...] = out.astype(o_ref.dtype)


def pallas_flash_attention(qkv3, k, v, cos_q, sin_q_signed, *, num_q_heads,
                           head_dim, tq=256, tk=256, causal=True):
    """qkv3: (B, S, dq+2*dkv) bf16 fused projection output (Q read in place);
    k, v: (B, G, S, D) bf16 (K already roped); cos_q/sin_q_signed: (S, D) f32.
    Returns attention output (B, S, num_q_heads*D) bf16, token-major."""
    B, S, C = qkv3.shape
    _, G, S2, D = k.shape
    assert S2 == S and D == head_dim
    n_rep = num_q_heads // G
    R = n_rep * D                   # query columns per KV group
    dq = num_q_heads * D
    tq, tk = min(tq, S), min(tk, S)
    assert S % tq == 0 and S % tk == 0 and tq % 8 == 0 and tk % 8 == 0
    assert R % 128 == 0, "n_rep*head_dim must be lane-aligned (multiple of 128)"

    scale = 1.0 / math.sqrt(D)
    kernel = functools.partial(_flash_attn_kernel, scale=scale, tq=tq, tk=tk,
                               n_rep=n_rep, head_dim=D, causal=causal)
    grid = (B, G, S // tq, S // tk)

    def kv_index_map(b, g, qi, ki):
        if causal:
            # Clamp so fully-masked blocks re-map to the last needed block:
            # consecutive equal indices -> no new K/V DMA is issued.
            ki = jnp.minimum(ki, ((qi + 1) * tq - 1) // tk)
        return (b, g, ki, 0)

    return pl.pallas_call(
        kernel,
        out_shape=jax.ShapeDtypeStruct((B, S, dq), jnp.bfloat16),
        grid_spec=pltpu.PrefetchScalarGridSpec(
            num_scalar_prefetch=0,
            grid=grid,
            in_specs=[
                # Q straight from the fused QKV buffer: token rows x the R
                # columns of this KV group (no XLA transpose of Q).
                pl.BlockSpec((None, tq, R), lambda b, g, qi, ki: (b, qi, g)),
                pl.BlockSpec((None, None, tk, D), kv_index_map),   # K (roped)
                pl.BlockSpec((None, None, tk, D), kv_index_map),   # V
                pl.BlockSpec((tq, D), lambda b, g, qi, ki: (qi, 0)),  # cos (q rows)
                pl.BlockSpec((tq, D), lambda b, g, qi, ki: (qi, 0)),  # sin (signed)
            ],
            # Lane-dense, token-major output: o_proj consumes it directly.
            out_specs=pl.BlockSpec((None, tq, R), lambda b, g, qi, ki: (b, qi, g)),
            scratch_shapes=[
                pltpu.VMEM((n_rep * tq, D), jnp.bfloat16),   # roped+scaled Q
                pltpu.VMEM((n_rep * tq, 1), jnp.float32),    # running max
                pltpu.VMEM((n_rep * tq, 1), jnp.float32),    # running denom
                pltpu.VMEM((n_rep * tq, D), jnp.float32),    # output accumulator
            ]),
        compiler_params=pltpu.CompilerParams(
            dimension_semantics=("parallel", "parallel", "parallel",
                                 "arbitrary")),
    )(qkv3, k, v, cos_q, sin_q_signed)


# ---------------------------------------------------------------------------
# Parameter setup (one-time: RoPE cache, sign-folded sin, bf16 transposed W)
# ---------------------------------------------------------------------------
def make_rope_cache(head_dim, max_pos, base=10000.0):
    inv_freq = 1.0 / (base ** (jnp.arange(0, head_dim, 2, dtype=jnp.float32)
                               / head_dim))
    t = jnp.arange(max_pos, dtype=jnp.float32)
    freqs = jnp.einsum("i,j->ij", t, inv_freq)            # (max_pos, D/2)
    emb = jnp.concatenate([freqs, freqs], axis=-1)         # (max_pos, D)
    return jnp.cos(emb), jnp.sin(emb)


def prepare_params(wq, wk, wv, wo, head_dim, max_pos, rope_base=10000.0):
    cos_cache, sin_cache = make_rope_cache(head_dim, max_pos, rope_base)
    half = head_dim // 2
    # rotate_half(x) == roll(x, D/2) * sign, sign = [-1]*half + [+1]*half.
    sign = jnp.concatenate([-jnp.ones((half,), jnp.float32),
                            jnp.ones((half,), jnp.float32)])
    return {
        # fp32 originals kept for the reference path
        "wq": wq, "wk": wk, "wv": wv, "wo": wo,
        # bf16, pre-transposed once (no per-call w.T), QKV fused
        "wqkv_t": jnp.concatenate([wq, wk, wv], axis=0).T.astype(jnp.bfloat16),
        "wo_t": wo.T.astype(jnp.bfloat16),
        "cos_cache": cos_cache,
        "sin_cache": sin_cache,
        "sin_signed_cache": sin_cache * sign[None, :],
    }


# ---------------------------------------------------------------------------
# Full LlamaAttention forward (hot path in Pallas; small KV plumbing in JAX)
# ---------------------------------------------------------------------------
def llama_attention_forward(hidden_states, params, position_ids,
                            num_heads, num_kv_heads, *,
                            tq=256, tk=256, proj_tm=256, proj_tn=256,
                            proj_tk=512):
    # NOTE: position_ids is (S,), shared across the batch (as in the test).
    B, S, H = hidden_states.shape
    D = H // num_heads
    G = num_kv_heads
    n_rep = num_heads // G
    dq, dkv = num_heads * D, G * D

    # Fused QKV projection; fp32->bf16 cast of the activation done in-kernel.
    qkv = pallas_matmul(hidden_states.reshape(B * S, H), params["wqkv_t"],
                        tm=proj_tm, tn=proj_tn, tk=proj_tk)   # (B*S, dq+2dkv)
    qkv3 = qkv.reshape(B, S, dq + 2 * dkv)                     # free reshape

    cos = params["cos_cache"][position_ids]                    # (S, D)
    sin = params["sin_cache"][position_ids]                    # (S, D)
    sin_signed = params["sin_signed_cache"][position_ids]      # (S, D)

    # K/V are the small tensors: split + head-major relayout + hoisted K-RoPE
    # in one fused XLA pass (Q and the attention output need no relayout).
    k = qkv3[:, :, dq:dq + dkv].reshape(B, S, G, D).transpose(0, 2, 1, 3)
    v = qkv3[:, :, dq + dkv:].reshape(B, S, G, D).transpose(0, 2, 1, 3)
    kf = k.astype(jnp.float32)
    k_rot = jnp.concatenate([-kf[..., D // 2:], kf[..., :D // 2]], axis=-1)
    k = (kf * cos[None, None] + k_rot * sin[None, None]).astype(jnp.bfloat16)

    attn = pallas_flash_attention(qkv3, k, v, cos, sin_signed,
                                  num_q_heads=num_heads, head_dim=D,
                                  tq=tq, tk=tk, causal=True)   # (B, S, dq)

    out = pallas_matmul(attn.reshape(B * S, dq), params["wo_t"],
                        out_dtype=jnp.float32,
                        tm=proj_tm, tn=proj_tn, tk=proj_tk)
    return out.reshape(B, S, H)


# ---------------------------------------------------------------------------
# Pure-JAX fp32 reference (mirrors the PyTorch semantics) for verification
# ---------------------------------------------------------------------------
def rotate_half_ref(x):
    half = x.shape[-1] // 2
    return jnp.concatenate([-x[..., half:], x[..., :half]], axis=-1)


def reference_forward(hidden_states, params, attention_mask, position_ids,
                      num_heads, num_kv_heads):
    B, S, H = hidden_states.shape
    D = H // num_heads
    n_rep = num_heads // num_kv_heads

    q = hidden_states @ params["wq"].T
    k = hidden_states @ params["wk"].T
    v = hidden_states @ params["wv"].T
    q = q.reshape(B, S, num_heads, D).transpose(0, 2, 1, 3)
    k = k.reshape(B, S, num_kv_heads, D).transpose(0, 2, 1, 3)
    v = v.reshape(B, S, num_kv_heads, D).transpose(0, 2, 1, 3)

    cos = params["cos_cache"][position_ids][None, None]
    sin = params["sin_cache"][position_ids][None, None]
    q = q * cos + rotate_half_ref(q) * sin
    k = k * cos + rotate_half_ref(k) * sin

    k = jnp.repeat(k, n_rep, axis=1)
    v = jnp.repeat(v, n_rep, axis=1)

    w = jnp.einsum("bhqd,bhkd->bhqk", q, k) / math.sqrt(D)
    w = w + attention_mask
    w = jax.nn.softmax(w.astype(jnp.float32), axis=-1)
    o = jnp.einsum("bhqk,bhkd->bhqd", w, v)
    o = o.transpose(0, 2, 1, 3).reshape(B, S, H)
    return o @ params["wo"].T


# ---------------------------------------------------------------------------
# Main
# ---------------------------------------------------------------------------
if __name__ == "__main__":
    # Small config consistent with LlamaAttention:
    #   hidden_size=256, num_attention_heads=4, num_key_value_heads=2,
    #   head_dim=64, max_position_embeddings=256, rope_scaling=None, tp=1
    B, S, H = 2, 128, 256
    num_heads, num_kv_heads = 4, 2
    D = H // num_heads
    max_pos = 256

    key = jax.random.PRNGKey(0)
    kx, kq, kk, kv_, ko = jax.random.split(key, 5)
    hidden_states = jax.random.normal(kx, (B, S, H), dtype=jnp.float32)

    w_scale = 0.02
    wq = w_scale * jax.random.normal(kq, (num_heads * D, H), jnp.float32)
    wk = w_scale * jax.random.normal(kk, (num_kv_heads * D, H), jnp.float32)
    wv = w_scale * jax.random.normal(kv_, (num_kv_heads * D, H), jnp.float32)
    wo = w_scale * jax.random.normal(ko, (H, num_heads * D), jnp.float32)
    params = prepare_params(wq, wk, wv, wo, D, max_pos)

    position_ids = jnp.arange(S, dtype=jnp.int32)

    # Reference with the explicit causal additive mask HF would pass in.
    neg = jnp.float32(-1e9)
    causal = jnp.where(jnp.tril(jnp.ones((S, S), dtype=bool)), 0.0, neg)
    attention_mask = jnp.broadcast_to(causal[None, None], (B, 1, S, S))
    ref = reference_forward(hidden_states, params, attention_mask,
                            position_ids, num_heads, num_kv_heads)

    # Case 1: default (large) tiles -> single-K-block projection kernels and a
    #         single KV block per q block (tq=tk clamped to S=128).
    out_default = llama_attention_forward(hidden_states, params, position_ids,
                                          num_heads, num_kv_heads)
    # Case 2: small tiles -> exercises the K-accumulation matmul path, the
    #         multi-block online softmax, the causal block skip and the
    #         clamped K/V index_map.
    out_small = llama_attention_forward(hidden_states, params, position_ids,
                                        num_heads, num_kv_heads,
                                        tq=64, tk=64, proj_tk=128)
    jax.block_until_ready((out_default, out_small))
    ref = jax.block_until_ready(ref)

    for name, out in (("default-tiles", out_default), ("small-tiles", out_small)):
        assert out.shape == (B, S, H)
        if not jnp.allclose(out, ref, rtol=3e-2, atol=3e-2):
            err = float(jnp.max(jnp.abs(out - ref)))
            raise AssertionError(
                f"{name}: Pallas output does not match reference "
                f"(max abs err {err})")

    print("KERNEL_OK")
</pallas_src>

<mosaic_0001>
module attributes {stable_mosaic.version = 11 : i64} {
  func.func @_matmul_kernel_single(%arg0: i32, %arg1: i32, %arg2: i32, %arg3: memref<256x256xf32, #tpu.memory_space<vmem>>, %arg4: memref<256x256xbf16, #tpu.memory_space<vmem>>, %arg5: memref<256x256xbf16, #tpu.memory_space<vmem>>) attributes {dimension_semantics = [#tpu.dimension_semantics<parallel>, #tpu.dimension_semantics<parallel>, #tpu.dimension_semantics<arbitrary>], iteration_bounds = array<i64: 1, 2, 1>, scalar_prefetch = 0 : i64, scratch_operands = 0 : i64, tpu.core_type = #tpu.core_type<tc>, window_params = [{transform_indices = @transform_0, window_bounds = array<i64: 256, 256>}, {transform_indices = @transform_1, window_bounds = array<i64: 256, 256>}, {transform_indices = @transform_2, window_bounds = array<i64: 256, 256>}]} {
    %c0 = arith.constant 0 : index
    %c0_0 = arith.constant 0 : index
    %0 = vector.load %arg3[%c0, %c0_0] : memref<256x256xf32, #tpu.memory_space<vmem>>, vector<256x256xf32>
    %1 = arith.truncf %0 : vector<256x256xf32> to vector<256x256xbf16>
    %c0_1 = arith.constant 0 : index
    %c0_2 = arith.constant 0 : index
    %2 = vector.load %arg4[%c0_1, %c0_2] : memref<256x256xbf16, #tpu.memory_space<vmem>>, vector<256x256xbf16>
    %cst = arith.constant dense<0.000000e+00> : vector<256x256xf32>
    %3 = tpu.matmul %1, %2, %cst {dimension_numbers = #tpu.dot_dimension_numbers<[1], [0], [0], [1], [0, 0, 1, 1], [], []>} : vector<256x256xbf16>, vector<256x256xbf16>, vector<256x256xf32> -> vector<256x256xf32>
    %4 = arith.truncf %3 : vector<256x256xf32> to vector<256x256xbf16>
    %c0_3 = arith.constant 0 : index
    %c0_4 = arith.constant 0 : index
    %5 = vector.load %arg5[%c0_3, %c0_4] : memref<256x256xbf16, #tpu.memory_space<vmem>>, vector<256x256xbf16>
    tpu.vector_store %arg5[%c0_3, %c0_4], %4 {strides = array<i32>} : memref<256x256xbf16, #tpu.memory_space<vmem>>, vector<256x256xbf16>,
    return
  }
  func.func @transform_0(%arg0: i32, %arg1: i32, %arg2: i32) -> (i32, i32) {
    %c0_i32 = arith.constant 0 : i32
    return %arg0, %arg2 : i32, i32
  }
  func.func @transform_1(%arg0: i32, %arg1: i32, %arg2: i32) -> (i32, i32) {
    %c0_i32 = arith.constant 0 : i32
    return %arg2, %arg1 : i32, i32
  }
  func.func @transform_2(%arg0: i32, %arg1: i32, %arg2: i32) -> (i32, i32) {
    %c0_i32 = arith.constant 0 : i32
    return %arg0, %arg1 : i32, i32
  }
}

</mosaic_0001>

<bundles_post_ra>
// kernel: tpu_custom_call.1
= control target key start
LH: loop header
LB: loop body
LE: loop exit
PB: predicated region body
PF: predicated region fallthrough
CT: control target
= control target key end

     0   :  { %7 = vsyncpa [#allocation3], 0  ;;  %s1747_s0 = inlined_call_operand.hbm [shape: f32[256,256], index: 0, kind: input, shape index: {}]   ;;  %s1748_s1 = inlined_call_operand.hbm [shape: bf16[256,512], index: 1, kind: input, shape index: {}]   ;;  %s1749_s2 = inlined_call_operand.hbm [shape: bf16[256,512], index: 2, kind: output, shape index: {}]  }
   0x1   :  { %8 = vsyncpa [#allocation6], 0 }
   0x2   :  { %10 = vsyncpa [#allocation6 + $0x1], 0 }
   0x3   :  { %11 = vsyncpa [#allocation4], 0 }
   0x4   :  { %13 = vsyncpa [#allocation4 + $0x1], 0  ;;  %s1490_s9 = smov 0   ;;  %s1492_s10 = smov 0  }
   0x5   :  { %s1494_s11 = smov 0   ;;  %s1496_s12 = smov 0  }
   0x6   :  { %s1498_s13 = smov 0   ;;  %s1500_s14 = smov 0  }
   0x7 LB: > { %s1060_s15 = sadd.s32 4294967295, %s1465_s14   ;;  %s1061_s16 = sadd.s32 4294967294, %s1465_s14   ;;  %s1465_s14 = sphi %s1500_s14, %s19_s14   ;;  %s1461_s13 = sphi %s1498_s13, %s1763_s13   ;;  %s1457_s12 = sphi %s1496_s12, %s1762_s12   ;;  %s1453_s11 = sphi %s1494_s11, %s1761_s11   ;;  %s1449_s10 = sphi %s1492_s10, %s1760_s10   ;;  %s1445_s9 = sphi %s1490_s9, %s1759_s9  }
   0x8   : > { %p88_p0 = scmp.ne.s32.totalorder %s1449_s10, %s1445_s9  ;;  %p1524_p1 = scmp.eq.s32.totalorder %s1060_s15, 0 }
   0x9   : > { %p1528_p2 = scmp.eq.s32.totalorder %s1060_s15, 1  ;;  %p120_p3 = scmp.eq.s32.totalorder %s1061_s16, 1 }
   0xa   : > { %p1534_p4 = por %p1524_p1, %p88_p0  ;;  %p1062_p5 = scmp.ge.s32.totalorder %s1465_s14, 1 }
   0xb   : > { %p1539_p6 = por %p120_p3, %p88_p0  ;;  %p127_p7 = scmp.lt.s32.totalorder %s1465_s14, 3 }
   0xc   : > { %s144_s23 = sshll.u32 %s1747_s0, 4  ;;  %s1467_s25 = smov [#allocation2]   ;;  %s145_s23 = int_to_ptr.hbm [resolvable:$true] %s144_s23 }
   0xd   : > { %p1547_p8 = pnand %p1062_p5, %p127_p7  ;;  %s146_s26 = sshll.u32 %s1467_s25, 4  ;;  %s147_s26 = int_to_ptr.vmem [resolvable:$true] %s146_s26 }
   0xe   : > { %p1064_p11 = scmp.ge.s32.totalorder %s1465_s14, 2  ;;  %s1750_s27 = smov 256  }
   0xf   : > { %p1247_p9 = pneg %p1547_p8  ;;  %s1469_s28 = smov 16  }
  0x10   : > { %s34_s29 = sadd.s32 1, %s1461_s13  ;;  %s75_s30 = sadd.s32 1, %s1453_s11 }
  0x11   : > { %p1248_p10 = pnand %p1247_p9, %p1524_p1  ;;  %p36_p12 = scmp.ge.s32.totalorder %s34_s29, 2 }
  0x12   : > { %p82_p13 = scmp.ne.s32.totalorder %s1453_s11, %s1449_s10  ;;  %p83_p0 = scmp.eq.s32.totalorder %s1465_s14, 0 }
  0x13   : > { %1250 = dma.hbm_to_vmem [thread:$0]  (!%p1248_p10), %s145_s23, 8192, %s147_s26, [#allocation3], %s1750_s27, %s1750_s27, %s1469_s28  }
  0x14   : > { %s1765_s29 = smov (%p36_p12, %s34_s29), 0  ;;  %p1565_p3 = por %p83_p0, %p82_p13 }
  0x15   : > { %p1571_p5 = por %p1528_p2, %p82_p13  ;;  %s71_s5 = ssub.s32 %s1461_s13, %s1765_s29 }
  0x16   : > { %p1260_p7 = scmp.lt.s32.totalorder %s1465_s14, 2  ;;  %p73_p9 = scmp.eq.s32.totalorder %s71_s5, 0 }
  0x17   : > { %s160_s6 = sand.u32 1, %s1453_s11   ;;  %s1205_s15 = sshll.u32 %s1461_s13, 3 }
  0x18   : > { %s1065_s7 = sshll.u32 %s160_s6, 8  ;;  %s172_s22 = scalar_lea.hbm %s1748_s1, %s1205_s15 }
  0x19   : > { %s1580_s8 = scalar_select %p73_p9, %s1453_s11, %s75_s30  }
  0x1a   : > { %s164_s23 = scalar_lea.vmem [#allocation5], %s1065_s7  ;;  %s173_s18 = sshll.u32 %s172_s22, 4  ;;  %s174_s18 = int_to_ptr.hbm [resolvable:$true] %s173_s18 }
  0x1b   : > { %s175_s25 = sshll.u32 %s164_s23, 4  ;;  %p1252_p2 = pnand %p1260_p7, %p1565_p3  ;;  %s176_s25 = int_to_ptr.vmem [resolvable:$true] %s175_s25 }
  0x1c   : > { %s161_s26 = scalar_lea.sflag [#allocation6], %s160_s6  ;;  %s1470_s28 = smov 128  }
  0x1d   : > { %s1471_s27 = smov 8   ;;  %s1758_s5 = smov 256  }
  0x1e   : > { %1254 = dma.hbm_to_vmem [thread:$0]  (!%p1252_p2), %s174_s18, 4096, %s176_s25, %s161_s26, %s1758_s5, %s1470_s28, %s1471_s27  }
  0x1f   : > { %187 = sbr.rel (%p1547_p8) target bundleno = 467 (0x1d3), region = 28 }
  0x24   : > { %1432 = dma.done.wait (%p1524_p1), [#allocation3], 8192  }
  0x25   : > { %1434 = vsyncadd (%p1524_p1), [#allocation3], 4294959104  ;;  %s1596_s30 = sand.u32 1, %s1449_s10  }
  0x26   : > { %s1070_s3 = sshll.u32 %s1596_s30, 8  ;;  %s195_s6 = scalar_lea.sflag [#allocation6], %s1596_s30 }
  0x27   : > { %s1602_s27 = scalar_lea.vmem [#allocation5], %s1070_s3 }
  0x28   : > { %1436 = dma.done.wait (%p1534_p4), %s195_s6, 4096  }
  0x29   : > { %1438 = vsyncadd (%p1534_p4), %s195_s6, 4294963200  ;;  %v1130_v0 = vld [vmem:[%s1602_s27 + $0x70] sm:$0xf]  ;;  %v1221_v1 = vld [vmem:[%s1602_s27 + $0x74] sm:$0xf0]  ;;  %s1674_s17 = scalar_lea.vmem [#allocation7], %s1070_s3 }
  0x2a   : > { %v1194_v2 = vld [vmem:[%s1602_s27 + $0xf0] sm:$0xf]  ;;  %v1131_v3 = vor.u32 %v1221_v1, %v1130_v0  ;;  %v1237_v4 = vld [vmem:[%s1602_s27 + $0xf4] sm:$0xf0]  ;;  %v1220_v5 = vld [vmem:[%s1602_s27 + $0x74] sm:$0xf] }
  0x2b   : > { %v1132_v6 = vld [vmem:[%s1602_s27 + $0x78] sm:$0xf0]  ;;  %v1195_v7 = vor.u32 %v1237_v4, %v1194_v2  ;;  %v1236_v9 = vld [vmem:[%s1602_s27 + $0xf4] sm:$0xf]  ;;  %v1122_v11 = vld [vmem:[%s1602_s27 + $0x60] sm:$0xf] }
  0x2c   : > { %v1135_v8 = vor.u32 %v1220_v5, %v1132_v6  ;;  %v1196_v10 = vld [vmem:[%s1602_s27 + $0xf8] sm:$0xf0]  ;;  %514 = vmatpush.bf16.msra.mxu0 %v1131_v3  ;;  %v1219_v13 = vld [vmem:[%s1602_s27 + $0x64] sm:$0xf0]  ;;  %v1186_v14 = vld [vmem:[%s1602_s27 + $0xe0] sm:$0xf] }
  0x2d   : > { %v1199_v12 = vor.u32 %v1236_v9, %v1196_v10  ;;  %v1235_v15 = vld [vmem:[%s1602_s27 + $0xe4] sm:$0xf0]  ;;  %603 = vmatpush.bf16.msra.mxu1 %v1195_v7  ;;  %v1123_v16 = vor.u32 %v1219_v13, %v1122_v11  ;;  %v1218_v18 = vld [vmem:[%s1602_s27 + $0x64] sm:$0xf]  ;;  %v1124_v19 = vld [vmem:[%s1602_s27 + $0x68] sm:$0xf0] }
  0x2e   : > { %692 = vmatpush.bf16.msra.mxu2 %v1135_v8  ;;  %v1187_v17 = vor.u32 %v1235_v15, %v1186_v14  ;;  %v1234_v20 = vld [vmem:[%s1602_s27 + $0xe4] sm:$0xf]  ;;  %v1127_v21 = vor.u32 %v1218_v18, %v1124_v19  ;;  %v1188_v22 = vld [vmem:[%s1602_s27 + $0xe8] sm:$0xf0]  ;;  %v1114_v23 = vld [vmem:[%s1602_s27 + $0x50] sm:$0xf] }
  0x2f   : > { %781 = vmatpush.bf16.msra.mxu3 %v1199_v12  ;;  %v1217_v24 = vld [vmem:[%s1602_s27 + $0x54] sm:$0xf0]  ;;  %v1191_v25 = vor.u32 %v1234_v20, %v1188_v22  ;;  %v1178_v26 = vld [vmem:[%s1602_s27 + $0xd0] sm:$0xf]  ;;  %v1216_v28 = vld [vmem:[%s1602_s27 + $0x54] sm:$0xf] }
  0x30   : > { %v1233_v27 = vld [vmem:[%s1602_s27 + $0xd4] sm:$0xf0]  ;;  %515 = vmatpush.bf16.msra.mxu0 %v1123_v16  ;;  %v1115_v29 = vor.u32 %v1217_v24, %v1114_v23  ;;  %v1116_v30 = vld [vmem:[%s1602_s27 + $0x58] sm:$0xf0]  ;;  %v1232_v31 = vld [vmem:[%s1602_s27 + $0xd4] sm:$0xf] }
  0x31   : > { %v1180_v32 = vld [vmem:[%s1602_s27 + $0xd8] sm:$0xf0]  ;;  %604 = vmatpush.bf16.msra.mxu1 %v1187_v17  ;;  %v1179_v33 = vor.u32 %v1233_v27, %v1178_v26  ;;  %v1119_v34 = vor.u32 %v1216_v28, %v1116_v30  ;;  %v1106_v35 = vld [vmem:[%s1602_s27 + $0x40] sm:$0xf]  ;;  %v1215_v36 = vld [vmem:[%s1602_s27 + $0x44] sm:$0xf0] }
  0x32   : > { %693 = vmatpush.bf16.msra.mxu2 %v1127_v21  ;;  %v1170_v37 = vld [vmem:[%s1602_s27 + $0xc0] sm:$0xf]  ;;  %v1183_v38 = vor.u32 %v1232_v31, %v1180_v32  ;;  %v1231_v39 = vld [vmem:[%s1602_s27 + $0xc4] sm:$0xf0]  ;;  %v1214_v40 = vld [vmem:[%s1602_s27 + $0x44] sm:$0xf]  ;;  %v1107_v44 = vor.u32 %v1215_v36, %v1106_v35 }
  0x33   : > { %782 = vmatpush.bf16.msra.mxu3 %v1191_v25  ;;  %v1108_v41 = vld [vmem:[%s1602_s27 + $0x48] sm:$0xf0]  ;;  %v1230_v42 = vld [vmem:[%s1602_s27 + $0xc4] sm:$0xf]  ;;  %v1171_v45 = vor.u32 %v1231_v39, %v1170_v37  ;;  %v1098_v47 = vld [vmem:[%s1602_s27 + $0x30] sm:$0xf] }
  0x34   : > { %v1172_v43 = vld [vmem:[%s1602_s27 + $0xc8] sm:$0xf0]  ;;  %516 = vmatpush.bf16.msra.mxu0 %v1115_v29  ;;  %v1111_v46 = vor.u32 %v1214_v40, %v1108_v41  ;;  %v1213_v48 = vld [vmem:[%s1602_s27 + $0x34] sm:$0xf0]  ;;  %v1162_v49 = vld [vmem:[%s1602_s27 + $0xb0] sm:$0xf] }
  0x35   : > { %605 = vmatpush.bf16.msra.mxu1 %v1179_v33  ;;  %v1175_v50 = vor.u32 %v1230_v42, %v1172_v43  ;;  %v1229_v51 = vld [vmem:[%s1602_s27 + $0xb4] sm:$0xf0]  ;;  %v1212_v52 = vld [vmem:[%s1602_s27 + $0x34] sm:$0xf]  ;;  %v1100_v53 = vld [vmem:[%s1602_s27 + $0x38] sm:$0xf0]  ;;  %v1099_v56 = vor.u32 %v1213_v48, %v1098_v47 }
  0x36   : > { %694 = vmatpush.bf16.msra.mxu2 %v1119_v34  ;;  %v1228_v54 = vld [vmem:[%s1602_s27 + $0xb4] sm:$0xf]  ;;  %v1164_v55 = vld [vmem:[%s1602_s27 + $0xb8] sm:$0xf0]  ;;  %v1163_v57 = vor.u32 %v1229_v51, %v1162_v49  ;;  %v1103_v58 = vor.u32 %v1212_v52, %v1100_v53  ;;  %v1090_v59 = vld [vmem:[%s1602_s27 + $0x20] sm:$0xf] }
  0x37   : > { %783 = vmatpush.bf16.msra.mxu3 %v1183_v38  ;;  %v1211_v60 = vld [vmem:[%s1602_s27 + $0x24] sm:$0xf0]  ;;  %v1154_v61 = vld [vmem:[%s1602_s27 + $0xa0] sm:$0xf]  ;;  %v1167_v62 = vor.u32 %v1228_v54, %v1164_v55  ;;  %v1210_v0 = vld [vmem:[%s1602_s27 + $0x24] sm:$0xf] }
  0x38   : > { %517 = vmatpush.bf16.msra.mxu0 %v1107_v44  ;;  %v1227_v63 = vld [vmem:[%s1602_s27 + $0xa4] sm:$0xf0]  ;;  %v1092_v1 = vld [vmem:[%s1602_s27 + $0x28] sm:$0xf0]  ;;  %v1226_v2 = vld [vmem:[%s1602_s27 + $0xa4] sm:$0xf]  ;;  %v1091_v4 = vor.u32 %v1211_v60, %v1090_v59 }
  0x39   : > { %606 = vmatpush.bf16.msra.mxu1 %v1171_v45  ;;  %v1156_v3 = vld [vmem:[%s1602_s27 + $0xa8] sm:$0xf0]  ;;  %v1155_v5 = vor.u32 %v1227_v63, %v1154_v61  ;;  %v1095_v6 = vor.u32 %v1210_v0, %v1092_v1  ;;  %v1082_v7 = vld [vmem:[%s1602_s27 + $0x10] sm:$0xf]  ;;  %v1209_v8 = vld [vmem:[%s1602_s27 + $0x14] sm:$0xf0] }
  0x3a   : > { %695 = vmatpush.bf16.msra.mxu2 %v1111_v46  ;;  %v1146_v9 = vld [vmem:[%s1602_s27 + $0x90] sm:$0xf]  ;;  %v1159_v10 = vor.u32 %v1226_v2, %v1156_v3  ;;  %v1225_v11 = vld [vmem:[%s1602_s27 + $0x94] sm:$0xf0]  ;;  %v1208_v12 = vld [vmem:[%s1602_s27 + $0x14] sm:$0xf]  ;;  %v1083_v16 = vor.u32 %v1209_v8, %v1082_v7 }
  0x3b   : > { %784 = vmatpush.bf16.msra.mxu3 %v1175_v50  ;;  %v1084_v13 = vld [vmem:[%s1602_s27 + $0x18] sm:$0xf0]  ;;  %v1224_v14 = vld [vmem:[%s1602_s27 + $0x94] sm:$0xf]  ;;  %v1147_v17 = vor.u32 %v1225_v11, %v1146_v9  ;;  %v1074_v19 = vld [vmem:[%s1602_s27] sm:$0xf] }
  0x3c   : > { %518 = vmatpush.bf16.msra.mxu0 %v1099_v56  ;;  %v1148_v15 = vld [vmem:[%s1602_s27 + $0x98] sm:$0xf0]  ;;  %v1087_v18 = vor.u32 %v1208_v12, %v1084_v13  ;;  %v1207_v20 = vld [vmem:[%s1602_s27 + $0x4] sm:$0xf0]  ;;  %v1138_v21 = vld [vmem:[%s1602_s27 + $0x80] sm:$0xf] }
  0x3d   : > { %607 = vmatpush.bf16.msra.mxu1 %v1163_v57  ;;  %v1151_v22 = vor.u32 %v1224_v14, %v1148_v15  ;;  %v1223_v23 = vld [vmem:[%s1602_s27 + $0x84] sm:$0xf0]  ;;  %v1206_v24 = vld [vmem:[%s1602_s27 + $0x4] sm:$0xf]  ;;  %v1076_v25 = vld [vmem:[%s1602_s27 + $0x8] sm:$0xf0]  ;;  %v1075_v28 = vor.u32 %v1207_v20, %v1074_v19 }
  0x3e   : > { %696 = vmatpush.bf16.msra.mxu2 %v1103_v58  ;;  %v1222_v26 = vld [vmem:[%s1602_s27 + $0x84] sm:$0xf]  ;;  %v1140_v27 = vld [vmem:[%s1602_s27 + $0x88] sm:$0xf0]  ;;  %v228_v30 = vld [vmem:[#allocation2 + $0x10] sm:$0xff]  ;;  %v1139_v31 = vor.u32 %v1223_v23, %v1138_v21  ;;  %v1079_v32 = vor.u32 %v1206_v24, %v1076_v25  ;;  %s1238_s19 = sshll.u32 %s1457_s12, 3 }
  0x3f   : > { %785 = vmatpush.bf16.msra.mxu3 %v1167_v62  ;;  %v226_v29 = vld [vmem:[#allocation2] sm:$0xff]  ;;  %v227_v33 = vld [vmem:[#allocation2 + $0x8] sm:$0xff]  ;;  %v229_v34 = vld [vmem:[#allocation2 + $0x18] sm:$0xff]  ;;  %v1143_v35 = vor.u32 %v1222_v26, %v1140_v27  ;;  %s949_s15 = scalar_lea.hbm %s1749_s2, %s1238_s19  ;;  %s950_s16 = sshll.u32 %s1674_s17, 4  ;;  %s951_s16 = int_to_ptr.vmem [resolvable:$true] %s950_s16 }
  0x40   : > { %519 = vmatpush.bf16.msra.mxu0 %v1091_v4  ;;  %v290_v36 = vpack.c.bf16 %v228_v30, %v226_v29  ;;  %v291_v37 = vpack.c.bf16 %v229_v34, %v227_v33  ;;  %v230_v38 = vld [vmem:[#allocation2 + $0x20] sm:$0xff]  ;;  %v232_v39 = vld [vmem:[#allocation2 + $0x30] sm:$0xff]  ;;  %v231_v40 = vld [vmem:[#allocation2 + $0x28] sm:$0xff]  ;;  %s952_s21 = sshll.u32 %s949_s15, 4  ;;  %s935_s12 = scalar_lea.sflag [#allocation4], %s1596_s30  ;;  %s953_s21 = int_to_ptr.hbm [resolvable:$true] %s952_s21 }
  0x41   : > { %608 = vmatpush.bf16.msra.mxu1 %v1155_v5  ;;  %v233_v41 = vld [vmem:[#allocation2 + $0x38] sm:$0xff]  ;;  %v292_v42 = vpack.c.bf16 %v232_v39, %v230_v38  ;;  %v234_v44 = vld [vmem:[#allocation2 + $0x40] sm:$0xff]  ;;  %v236_v45 = vld [vmem:[#allocation2 + $0x50] sm:$0xff]  ;;  %s1393_s22 = sshra.s32 %s953_s21, 4  ;;  %s1399_s26 = scalar_lea.hbm %s1749_s2, 512  ;;  %s1394_s22 = int_to_ptr.hbm [resolvable:$true] %s1393_s22 }
  0x42   : > { %697 = vmatpush.bf16.msra.mxu2 %v1095_v6  ;;  %v293_v43 = vpack.c.bf16 %v233_v41, %v231_v40  ;;  %v235_v46 = vld [vmem:[#allocation2 + $0x48] sm:$0xff]  ;;  %v237_v47 = vld [vmem:[#allocation2 + $0x58] sm:$0xff]  ;;  %v294_v48 = vpack.c.bf16 %v236_v45, %v234_v44  ;;  %v238_v50 = vld [vmem:[#allocation2 + $0x60] sm:$0xff]  ;;  %s1395_s23 = scalar_lea.hbm %s1394_s22, 256  ;;  %p1400_p10 = scmp.lt.s32.totalorder %s1394_s22, %s1749_s2 }
  0x43   : > { %786 = vmatpush.bf16.msra.mxu3 %v1159_v10  ;;  %v295_v49 = vpack.c.bf16 %v237_v47, %v235_v46  ;;  %v240_v51 = vld [vmem:[#allocation2 + $0x70] sm:$0xff]  ;;  %v239_v52 = vld [vmem:[#allocation2 + $0x68] sm:$0xff]  ;;  %v241_v53 = vld [vmem:[#allocation2 + $0x78] sm:$0xff]  ;;  %p1396_p1 = scmp.ne.s32.totalorder %s1394_s22, %s1395_s23  ;;  %p1401_p12 = scmp.lt.s32.totalorder %s1399_s26, %s1395_s23 }
  0x44   : > { %520 = vmatpush.bf16.msra.mxu0 %v1083_v16  ;;  %v296_v54 = vpack.c.bf16 %v240_v51, %v238_v50  ;;  %v297_v55 = vpack.c.bf16 %v241_v53, %v239_v52  ;;  %v242_v56 = vld [vmem:[#allocation2 + $0x80] sm:$0xff]  ;;  %v244_v57 = vld [vmem:[#allocation2 + $0x90] sm:$0xff]  ;;  %v243_v58 = vld [vmem:[#allocation2 + $0x88] sm:$0xff] }
  0x45   : > { %609 = vmatpush.bf16.msra.mxu1 %v1147_v17  ;;  %v245_v59 = vld [vmem:[#allocation2 + $0x98] sm:$0xff]  ;;  %v298_v60 = vpack.c.bf16 %v244_v57, %v242_v56  ;;  %v246_v62 = vld [vmem:[#allocation2 + $0xa0] sm:$0xff]  ;;  %v248_v63 = vld [vmem:[#allocation2 + $0xb0] sm:$0xff]  ;;  %p1397_p4 = pnand %p1396_p1, %p1571_p5  ;;  %p1402_p13 = por %p1401_p12, %p1400_p10 }
  0x46   : > { %698 = vmatpush.bf16.msra.mxu2 %v1087_v18  ;;  %v299_v61 = vpack.c.bf16 %v245_v59, %v243_v58  ;;  %v247_v0 = vld [vmem:[#allocation2 + $0xa8] sm:$0xff]  ;;  %v249_v1 = vld [vmem:[#allocation2 + $0xb8] sm:$0xff]  ;;  %v300_v2 = vpack.c.bf16 %v248_v63, %v246_v62  ;;  %v250_v4 = vld [vmem:[#allocation2 + $0xc0] sm:$0xff] }
  0x47   : > { %787 = vmatpush.bf16.msra.mxu3 %v1151_v22  ;;  %v301_v3 = vpack.c.bf16 %v249_v1, %v247_v0  ;;  %v252_v5 = vld [vmem:[#allocation2 + $0xd0] sm:$0xff]  ;;  %v251_v6 = vld [vmem:[#allocation2 + $0xc8] sm:$0xff]  ;;  %v253_v7 = vld [vmem:[#allocation2 + $0xd8] sm:$0xff]  ;;  %p1398_p8 = pneg %p1397_p4 }
  0x48   : > { %521 = vmatpush.bf16.msra.mxu0 %v1075_v28  ;;  %v302_v8 = vpack.c.bf16 %v252_v5, %v250_v4  ;;  %v303_v9 = vpack.c.bf16 %v253_v7, %v251_v6  ;;  %v254_v10 = vld [vmem:[#allocation2 + $0xe0] sm:$0xff]  ;;  %v256_v11 = vld [vmem:[#allocation2 + $0xf0] sm:$0xff]  ;;  %v255_v12 = vld [vmem:[#allocation2 + $0xe8] sm:$0xff] }
  0x49   : > { %610 = vmatpush.bf16.msra.mxu1 %v1139_v31  ;;  %v257_v13 = vld [vmem:[#allocation2 + $0xf8] sm:$0xff]  ;;  %v304_v14 = vpack.c.bf16 %v256_v11, %v254_v10  ;;  %v258_v16 = vld [vmem:[#allocation2 + $0x100] sm:$0xff]  ;;  %v260_v17 = vld [vmem:[#allocation2 + $0x110] sm:$0xff]  ;;  %p1403_p0 = pnand %p1402_p13, %p1398_p8 }
  0x4a   : > { %699 = vmatpush.bf16.msra.mxu2 %v1079_v32  ;;  %v305_v15 = vpack.c.bf16 %v257_v13, %v255_v12  ;;  %v259_v18 = vld [vmem:[#allocation2 + $0x108] sm:$0xff]  ;;  %v261_v19 = vld [vmem:[#allocation2 + $0x118] sm:$0xff]  ;;  %v306_v20 = vpack.c.bf16 %v260_v17, %v258_v16  ;;  %v262_v31 = vld [vmem:[#allocation2 + $0x120] sm:$0xff] }
  0x4b   : > { %788 = vmatpush.bf16.msra.mxu3 %v1143_v35  ;;  %522 = vmatmul.bf16.vlgmr.msra.gmra.mxu0 %v290_v36  ;;  %v307_v22 = vpack.c.bf16 %v261_v19, %v259_v18  ;;  %v264_v32 = vld [vmem:[#allocation2 + $0x130] sm:$0xff]  ;;  %v263_v33 = vld [vmem:[#allocation2 + $0x128] sm:$0xff]  ;;  %v265_v34 = vld [vmem:[#allocation2 + $0x138] sm:$0xff] }
  0x4c   : > { %611 = vmatmul.bf16.vlgmr.msra.gmra.mxu1 %v291_v37  ;;  %v309_v39 = vpack.c.bf16 %v265_v34, %v263_v33  ;;  %v266_v51 = vld [vmem:[#allocation2 + $0x140] sm:$0xff]  ;;  %v268_v52 = vld [vmem:[#allocation2 + $0x150] sm:$0xff]  ;;  %v267_v53 = vld [vmem:[#allocation2 + $0x148] sm:$0xff] }
  0x4d   : > { %700 = vmatmul.bf16.vlgmr.msra.gmra.mxu2 %v290_v36  ;;  %v308_v36 = vpack.c.bf16 %v264_v32, %v262_v31  ;;  %v310_v56 = vpack.c.bf16 %v268_v52, %v266_v51  ;;  %v270_v7 = vld [vmem:[#allocation2 + $0x160] sm:$0xff]  ;;  %v273_v10 = vld [vmem:[#allocation2 + $0x178] sm:$0xff] }
  0x4e   : > { %789 = vmatmul.bf16.vlgmr.msra.gmra.mxu3 %v291_v37 }
  0x5b   : > { %527 = vmatmul.bf16.gmra.mxu0 %v292_v42 }
  0x5c   : > { %616 = vmatmul.bf16.gmra.mxu1 %v293_v43 }
  0x5d   : > { %705 = vmatmul.bf16.gmra.mxu2 %v292_v42 }
  0x5e   : > { %794 = vmatmul.bf16.gmra.mxu3 %v293_v43 }
  0x6b   : > { %532 = vmatmul.bf16.gmra.mxu0 %v294_v48 }
  0x6c   : > { %621 = vmatmul.bf16.gmra.mxu1 %v295_v49 }
  0x6d   : > { %710 = vmatmul.bf16.gmra.mxu2 %v294_v48 }
  0x6e   : > { %799 = vmatmul.bf16.gmra.mxu3 %v295_v49 }
  0x7b   : > { %537 = vmatmul.bf16.gmra.mxu0 %v296_v54 }
  0x7c   : > { %626 = vmatmul.bf16.gmra.mxu1 %v297_v55 }
  0x7d   : > { %715 = vmatmul.bf16.gmra.mxu2 %v296_v54  ;;  %v269_v54 = vld [vmem:[#allocation2 + $0x158] sm:$0xff] }
  0x7e   : > { %804 = vmatmul.bf16.gmra.mxu3 %v297_v55  ;;  %v311_v59 = vpack.c.bf16 %v269_v54, %v267_v53 }
  0x8b   : > { %542 = vmatmul.bf16.gmra.mxu0 %v298_v60 }
  0x8c   : > { %631 = vmatmul.bf16.gmra.mxu1 %v299_v61 }
  0x8d   : > { %720 = vmatmul.bf16.gmra.mxu2 %v298_v60 }
  0x8e   : > { %809 = vmatmul.bf16.gmra.mxu3 %v299_v61 }
  0x9b   : > { %547 = vmatmul.bf16.gmra.mxu0 %v300_v2 }
  0x9c   : > { %636 = vmatmul.bf16.gmra.mxu1 %v301_v3 }
  0x9d   : > { %725 = vmatmul.bf16.gmra.mxu2 %v300_v2 }
  0x9e   : > { %814 = vmatmul.bf16.gmra.mxu3 %v301_v3 }
  0xab   : > { %552 = vmatmul.bf16.gmra.mxu0 %v302_v8 }
  0xac   : > { %641 = vmatmul.bf16.gmra.mxu1 %v303_v9 }
  0xad   : > { %730 = vmatmul.bf16.gmra.mxu2 %v302_v8  ;;  %v272_v8 = vld [vmem:[#allocation2 + $0x170] sm:$0xff] }
  0xae   : > { %819 = vmatmul.bf16.gmra.mxu3 %v303_v9  ;;  %v271_v9 = vld [vmem:[#allocation2 + $0x168] sm:$0xff]  ;;  %v312_v12 = vpack.c.bf16 %v272_v8, %v270_v7 }
  0xbb   : > { %557 = vmatmul.bf16.gmra.mxu0 %v304_v14 }
  0xbc   : > { %646 = vmatmul.bf16.gmra.mxu1 %v305_v15 }
  0xbd   : > { %735 = vmatmul.bf16.gmra.mxu2 %v304_v14 }
  0xbe   : > { %824 = vmatmul.bf16.gmra.mxu3 %v305_v15  ;;  %v313_v15 = vpack.c.bf16 %v273_v10, %v271_v9 }
  0xc8   : > { %v523_v21 = vpop.f32.mrf.mxu0 }
  0xc9   : > { %v612_v23 = vpop.f32.mrf.mxu1 }
  0xca   : > { %v613_v24 = vadd.f32 %v612_v23, %v523_v21 }
  0xcb   : > { %562 = vmatmul.bf16.gmra.mxu0 %v306_v20 }
  0xcc   : > { %651 = vmatmul.bf16.gmra.mxu1 %v307_v22 }
  0xcd   : > { %740 = vmatmul.bf16.gmra.mxu2 %v306_v20 }
  0xce   : > { %829 = vmatmul.bf16.gmra.mxu3 %v307_v22 }
  0xd0   : > { %v701_v25 = vpop.f32.mrf.mxu2  ;;  %v525_v27 = vpop.f32.mrf.mxu0 }
  0xd1   : > { %v790_v26 = vpop.f32.mrf.mxu3  ;;  %v614_v29 = vpop.f32.mrf.mxu1 }
  0xd2   : > { %v791_v28 = vadd.f32 %v790_v26, %v701_v25  ;;  %v615_v40 = vadd.f32 %v614_v29, %v525_v27  ;;  %v274_v27 = vld [vmem:[#allocation2 + $0x180] sm:$0xff]  ;;  %v275_v29 = vld [vmem:[#allocation2 + $0x188] sm:$0xff] }
  0xd4   : > { %v870_v30 = vpack.c.bf16 %v791_v28, %v613_v24  ;;  %v276_v28 = vld [vmem:[#allocation2 + $0x190] sm:$0xff] }
  0xd5   : > { %v314_v32 = vpack.c.bf16 %v276_v28, %v274_v27 }
  0xd6   : > { %902 = vst [vmem:[%s1674_s17] sm:$0xff] %v870_v30  ;;  %v277_v30 = vld [vmem:[#allocation2 + $0x198] sm:$0xff] }
  0xd8   : > { %v703_v35 = vpop.f32.mrf.mxu2  ;;  %v528_v38 = vpop.f32.mrf.mxu0 }
  0xd9   : > { %v792_v37 = vpop.f32.mrf.mxu3  ;;  %v617_v42 = vpop.f32.mrf.mxu1 }
  0xda   : > { %v793_v41 = vadd.f32 %v792_v37, %v703_v35  ;;  %v618_v44 = vadd.f32 %v617_v42, %v528_v38  ;;  %v315_v35 = vpack.c.bf16 %v277_v30, %v275_v29 }
  0xdb   : > { %567 = vmatmul.bf16.gmra.mxu0 %v308_v36 }
  0xdc   : > { %v871_v43 = vpack.c.bf16 %v793_v41, %v615_v40  ;;  %656 = vmatmul.bf16.gmra.mxu1 %v309_v39 }
  0xdd   : > { %745 = vmatmul.bf16.gmra.mxu2 %v308_v36 }
  0xde   : > { %903 = vst [vmem:[%s1674_s17 + $0x8] sm:$0xff] %v871_v43  ;;  %834 = vmatmul.bf16.gmra.mxu3 %v309_v39 }
  0xe0   : > { %v706_v45 = vpop.f32.mrf.mxu2  ;;  %v530_v47 = vpop.f32.mrf.mxu0 }
  0xe1   : > { %v795_v46 = vpop.f32.mrf.mxu3  ;;  %v619_v49 = vpop.f32.mrf.mxu1 }
  0xe2   : > { %v796_v48 = vadd.f32 %v795_v46, %v706_v45  ;;  %v620_v60 = vadd.f32 %v619_v49, %v530_v47  ;;  %v278_v47 = vld [vmem:[#allocation2 + $0x1a0] sm:$0xff]  ;;  %v279_v49 = vld [vmem:[#allocation2 + $0x1a8] sm:$0xff] }
  0xe4   : > { %v872_v50 = vpack.c.bf16 %v796_v48, %v618_v44  ;;  %v280_v48 = vld [vmem:[#allocation2 + $0x1b0] sm:$0xff] }
  0xe5   : > { %v316_v52 = vpack.c.bf16 %v280_v48, %v278_v47 }
  0xe6   : > { %904 = vst [vmem:[%s1674_s17 + $0x10] sm:$0xff] %v872_v50  ;;  %v281_v50 = vld [vmem:[#allocation2 + $0x1b8] sm:$0xff] }
  0xe8   : > { %v708_v55 = vpop.f32.mrf.mxu2  ;;  %v533_v58 = vpop.f32.mrf.mxu0 }
  0xe9   : > { %v797_v57 = vpop.f32.mrf.mxu3  ;;  %v622_v62 = vpop.f32.mrf.mxu1 }
  0xea   : > { %v798_v61 = vadd.f32 %v797_v57, %v708_v55  ;;  %v623_v0 = vadd.f32 %v622_v62, %v533_v58  ;;  %v317_v55 = vpack.c.bf16 %v281_v50, %v279_v49 }
  0xeb   : > { %572 = vmatmul.bf16.gmra.mxu0 %v310_v56 }
  0xec   : > { %v873_v63 = vpack.c.bf16 %v798_v61, %v620_v60  ;;  %661 = vmatmul.bf16.gmra.mxu1 %v311_v59 }
  0xed   : > { %750 = vmatmul.bf16.gmra.mxu2 %v310_v56 }
  0xee   : > { %905 = vst [vmem:[%s1674_s17 + $0x18] sm:$0xff] %v873_v63  ;;  %839 = vmatmul.bf16.gmra.mxu3 %v311_v59 }
  0xf0   : > { %v711_v1 = vpop.f32.mrf.mxu2  ;;  %v535_v3 = vpop.f32.mrf.mxu0 }
  0xf1   : > { %v800_v2 = vpop.f32.mrf.mxu3  ;;  %v624_v5 = vpop.f32.mrf.mxu1 }
  0xf2   : > { %v801_v4 = vadd.f32 %v800_v2, %v711_v1  ;;  %v625_v16 = vadd.f32 %v624_v5, %v535_v3  ;;  %v282_v3 = vld [vmem:[#allocation2 + $0x1c0] sm:$0xff]  ;;  %v283_v5 = vld [vmem:[#allocation2 + $0x1c8] sm:$0xff] }
  0xf4   : > { %v874_v6 = vpack.c.bf16 %v801_v4, %v623_v0  ;;  %v284_v4 = vld [vmem:[#allocation2 + $0x1d0] sm:$0xff] }
  0xf5   : > { %v318_v8 = vpack.c.bf16 %v284_v4, %v282_v3 }
  0xf6   : > { %906 = vst [vmem:[%s1674_s17 + $0x20] sm:$0xff] %v874_v6  ;;  %v285_v6 = vld [vmem:[#allocation2 + $0x1d8] sm:$0xff] }
  0xf8   : > { %v713_v11 = vpop.f32.mrf.mxu2  ;;  %v538_v14 = vpop.f32.mrf.mxu0 }
  0xf9   : > { %v802_v13 = vpop.f32.mrf.mxu3  ;;  %v627_v18 = vpop.f32.mrf.mxu1 }
  0xfa   : > { %v803_v17 = vadd.f32 %v802_v13, %v713_v11  ;;  %v628_v20 = vadd.f32 %v627_v18, %v538_v14  ;;  %v319_v11 = vpack.c.bf16 %v285_v6, %v283_v5 }
  0xfb   : > { %577 = vmatmul.bf16.gmra.mxu0 %v312_v12 }
  0xfc   : > { %v875_v19 = vpack.c.bf16 %v803_v17, %v625_v16  ;;  %666 = vmatmul.bf16.gmra.mxu1 %v313_v15 }
  0xfd   : > { %755 = vmatmul.bf16.gmra.mxu2 %v312_v12 }
  0xfe   : > { %907 = vst [vmem:[%s1674_s17 + $0x28] sm:$0xff] %v875_v19  ;;  %844 = vmatmul.bf16.gmra.mxu3 %v313_v15 }
 0x100   : > { %v716_v21 = vpop.f32.mrf.mxu2  ;;  %v540_v23 = vpop.f32.mrf.mxu0 }
 0x101   : > { %v805_v22 = vpop.f32.mrf.mxu3  ;;  %v629_v25 = vpop.f32.mrf.mxu1 }
 0x102   : > { %v806_v24 = vadd.f32 %v805_v22, %v716_v21  ;;  %v630_v36 = vadd.f32 %v629_v25, %v540_v23  ;;  %v286_v23 = vld [vmem:[#allocation2 + $0x1e0] sm:$0xff]  ;;  %v287_v25 = vld [vmem:[#allocation2 + $0x1e8] sm:$0xff] }
 0x104   : > { %v876_v26 = vpack.c.bf16 %v806_v24, %v628_v20  ;;  %v288_v24 = vld [vmem:[#allocation2 + $0x1f0] sm:$0xff] }
 0x105   : > { %v320_v28 = vpack.c.bf16 %v288_v24, %v286_v23 }
 0x106   : > { %908 = vst [vmem:[%s1674_s17 + $0x30] sm:$0xff] %v876_v26  ;;  %v289_v26 = vld [vmem:[#allocation2 + $0x1f8] sm:$0xff] }
 0x108   : > { %v718_v31 = vpop.f32.mrf.mxu2  ;;  %v543_v34 = vpop.f32.mrf.mxu0 }
 0x109   : > { %v807_v33 = vpop.f32.mrf.mxu3  ;;  %v632_v38 = vpop.f32.mrf.mxu1 }
 0x10a   : > { %v808_v37 = vadd.f32 %v807_v33, %v718_v31  ;;  %v633_v40 = vadd.f32 %v632_v38, %v543_v34  ;;  %v321_v31 = vpack.c.bf16 %v289_v26, %v287_v25 }
 0x10b   : > { %582 = vmatmul.bf16.gmra.mxu0 %v314_v32 }
 0x10c   : > { %v877_v39 = vpack.c.bf16 %v808_v37, %v630_v36  ;;  %671 = vmatmul.bf16.gmra.mxu1 %v315_v35 }
 0x10d   : > { %760 = vmatmul.bf16.gmra.mxu2 %v314_v32 }
 0x10e   : > { %909 = vst [vmem:[%s1674_s17 + $0x38] sm:$0xff] %v877_v39  ;;  %849 = vmatmul.bf16.gmra.mxu3 %v315_v35 }
 0x110   : > { %v721_v41 = vpop.f32.mrf.mxu2  ;;  %v545_v43 = vpop.f32.mrf.mxu0 }
 0x111   : > { %v810_v42 = vpop.f32.mrf.mxu3  ;;  %v634_v45 = vpop.f32.mrf.mxu1 }
 0x112   : > { %v811_v44 = vadd.f32 %v810_v42, %v721_v41  ;;  %v635_v56 = vadd.f32 %v634_v45, %v545_v43 }
 0x114   : > { %v878_v46 = vpack.c.bf16 %v811_v44, %v633_v40 }
 0x116   : > { %910 = vst [vmem:[%s1674_s17 + $0x40] sm:$0xff] %v878_v46 }
 0x118   : > { %v723_v51 = vpop.f32.mrf.mxu2  ;;  %v548_v54 = vpop.f32.mrf.mxu0 }
 0x119   : > { %v812_v53 = vpop.f32.mrf.mxu3  ;;  %v637_v58 = vpop.f32.mrf.mxu1 }
 0x11a   : > { %v813_v57 = vadd.f32 %v812_v53, %v723_v51  ;;  %v638_v60 = vadd.f32 %v637_v58, %v548_v54 }
 0x11b   : > { %587 = vmatmul.bf16.gmra.mxu0 %v316_v52 }
 0x11c   : > { %v879_v59 = vpack.c.bf16 %v813_v57, %v635_v56  ;;  %676 = vmatmul.bf16.gmra.mxu1 %v317_v55 }
 0x11d   : > { %765 = vmatmul.bf16.gmra.mxu2 %v316_v52 }
 0x11e   : > { %911 = vst [vmem:[%s1674_s17 + $0x48] sm:$0xff] %v879_v59  ;;  %854 = vmatmul.bf16.gmra.mxu3 %v317_v55 }
 0x120   : > { %v726_v61 = vpop.f32.mrf.mxu2  ;;  %v550_v63 = vpop.f32.mrf.mxu0 }
 0x121   : > { %v815_v62 = vpop.f32.mrf.mxu3  ;;  %v639_v1 = vpop.f32.mrf.mxu1 }
 0x122   : > { %v816_v0 = vadd.f32 %v815_v62, %v726_v61  ;;  %v640_v12 = vadd.f32 %v639_v1, %v550_v63 }
 0x124   : > { %v880_v2 = vpack.c.bf16 %v816_v0, %v638_v60 }
 0x126   : > { %912 = vst [vmem:[%s1674_s17 + $0x50] sm:$0xff] %v880_v2 }
 0x128   : > { %v728_v7 = vpop.f32.mrf.mxu2  ;;  %v553_v10 = vpop.f32.mrf.mxu0 }
 0x129   : > { %v817_v9 = vpop.f32.mrf.mxu3  ;;  %v642_v14 = vpop.f32.mrf.mxu1 }
 0x12a   : > { %v818_v13 = vadd.f32 %v817_v9, %v728_v7  ;;  %v643_v16 = vadd.f32 %v642_v14, %v553_v10 }
 0x12b   : > { %592 = vmatmul.bf16.gmra.mxu0 %v318_v8 }
 0x12c   : > { %v881_v15 = vpack.c.bf16 %v818_v13, %v640_v12  ;;  %681 = vmatmul.bf16.gmra.mxu1 %v319_v11 }
 0x12d   : > { %770 = vmatmul.bf16.gmra.mxu2 %v318_v8 }
 0x12e   : > { %913 = vst [vmem:[%s1674_s17 + $0x58] sm:$0xff] %v881_v15  ;;  %859 = vmatmul.bf16.gmra.mxu3 %v319_v11 }
 0x130   : > { %v731_v17 = vpop.f32.mrf.mxu2  ;;  %v555_v19 = vpop.f32.mrf.mxu0 }
 0x131   : > { %v820_v18 = vpop.f32.mrf.mxu3  ;;  %v644_v21 = vpop.f32.mrf.mxu1 }
 0x132   : > { %v821_v20 = vadd.f32 %v820_v18, %v731_v17  ;;  %v645_v32 = vadd.f32 %v644_v21, %v555_v19 }
 0x134   : > { %v882_v22 = vpack.c.bf16 %v821_v20, %v643_v16 }
 0x136   : > { %914 = vst [vmem:[%s1674_s17 + $0x60] sm:$0xff] %v882_v22 }
 0x138   : > { %v733_v27 = vpop.f32.mrf.mxu2  ;;  %v558_v30 = vpop.f32.mrf.mxu0 }
 0x139   : > { %v822_v29 = vpop.f32.mrf.mxu3  ;;  %v647_v34 = vpop.f32.mrf.mxu1 }
 0x13a   : > { %v823_v33 = vadd.f32 %v822_v29, %v733_v27  ;;  %v648_v36 = vadd.f32 %v647_v34, %v558_v30 }
 0x13b   : > { %597 = vmatmul.bf16.gmra.mxu0 %v320_v28 }
 0x13c   : > { %v883_v35 = vpack.c.bf16 %v823_v33, %v645_v32  ;;  %686 = vmatmul.bf16.gmra.mxu1 %v321_v31 }
 0x13d   : > { %775 = vmatmul.bf16.gmra.mxu2 %v320_v28 }
 0x13e   : > { %915 = vst [vmem:[%s1674_s17 + $0x68] sm:$0xff] %v883_v35  ;;  %864 = vmatmul.bf16.gmra.mxu3 %v321_v31 }
 0x140   : > { %v736_v37 = vpop.f32.mrf.mxu2  ;;  %v560_v39 = vpop.f32.mrf.mxu0 }
 0x141   : > { %v825_v38 = vpop.f32.mrf.mxu3  ;;  %v649_v41 = vpop.f32.mrf.mxu1 }
 0x142   : > { %v826_v40 = vadd.f32 %v825_v38, %v736_v37  ;;  %v650_v46 = vadd.f32 %v649_v41, %v560_v39 }
 0x144   : > { %v884_v42 = vpack.c.bf16 %v826_v40, %v648_v36 }
 0x146   : > { %916 = vst [vmem:[%s1674_s17 + $0x70] sm:$0xff] %v884_v42 }
 0x148   : > { %v738_v43 = vpop.f32.mrf.mxu2  ;;  %v563_v45 = vpop.f32.mrf.mxu0 }
 0x149   : > { %v827_v44 = vpop.f32.mrf.mxu3  ;;  %v652_v48 = vpop.f32.mrf.mxu1 }
 0x14a   : > { %v828_v47 = vadd.f32 %v827_v44, %v738_v43  ;;  %v653_v50 = vadd.f32 %v652_v48, %v563_v45 }
 0x14c   : > { %v885_v49 = vpack.c.bf16 %v828_v47, %v650_v46 }
 0x14e   : > { %917 = vst [vmem:[%s1674_s17 + $0x78] sm:$0xff] %v885_v49 }
 0x150   : > { %v741_v51 = vpop.f32.mrf.mxu2  ;;  %v565_v53 = vpop.f32.mrf.mxu0 }
 0x151   : > { %v830_v52 = vpop.f32.mrf.mxu3  ;;  %v654_v55 = vpop.f32.mrf.mxu1 }
 0x152   : > { %v831_v54 = vadd.f32 %v830_v52, %v741_v51  ;;  %v655_v60 = vadd.f32 %v654_v55, %v565_v53 }
 0x154   : > { %v886_v56 = vpack.c.bf16 %v831_v54, %v653_v50 }
 0x156   : > { %918 = vst [vmem:[%s1674_s17 + $0x80] sm:$0xff] %v886_v56 }
 0x158   : > { %v743_v57 = vpop.f32.mrf.mxu2  ;;  %v568_v59 = vpop.f32.mrf.mxu0 }
 0x159   : > { %v832_v58 = vpop.f32.mrf.mxu3  ;;  %v657_v62 = vpop.f32.mrf.mxu1 }
 0x15a   : > { %v833_v61 = vadd.f32 %v832_v58, %v743_v57  ;;  %v658_v0 = vadd.f32 %v657_v62, %v568_v59 }
 0x15c   : > { %v887_v63 = vpack.c.bf16 %v833_v61, %v655_v60 }
 0x15e   : > { %919 = vst [vmem:[%s1674_s17 + $0x88] sm:$0xff] %v887_v63 }
 0x160   : > { %v746_v1 = vpop.f32.mrf.mxu2  ;;  %v570_v3 = vpop.f32.mrf.mxu0 }
 0x161   : > { %v835_v2 = vpop.f32.mrf.mxu3  ;;  %v659_v5 = vpop.f32.mrf.mxu1 }
 0x162   : > { %v836_v4 = vadd.f32 %v835_v2, %v746_v1  ;;  %v660_v10 = vadd.f32 %v659_v5, %v570_v3 }
 0x164   : > { %v888_v6 = vpack.c.bf16 %v836_v4, %v658_v0 }
 0x166   : > { %920 = vst [vmem:[%s1674_s17 + $0x90] sm:$0xff] %v888_v6 }
 0x168   : > { %v748_v7 = vpop.f32.mrf.mxu2  ;;  %v573_v9 = vpop.f32.mrf.mxu0 }
 0x169   : > { %v837_v8 = vpop.f32.mrf.mxu3  ;;  %v662_v12 = vpop.f32.mrf.mxu1 }
 0x16a   : > { %v838_v11 = vadd.f32 %v837_v8, %v748_v7  ;;  %v663_v14 = vadd.f32 %v662_v12, %v573_v9 }
 0x16c   : > { %v889_v13 = vpack.c.bf16 %v838_v11, %v660_v10 }
 0x16e   : > { %921 = vst [vmem:[%s1674_s17 + $0x98] sm:$0xff] %v889_v13 }
 0x170   : > { %v751_v15 = vpop.f32.mrf.mxu2  ;;  %v575_v17 = vpop.f32.mrf.mxu0 }
 0x171   : > { %v840_v16 = vpop.f32.mrf.mxu3  ;;  %v664_v19 = vpop.f32.mrf.mxu1 }
 0x172   : > { %v841_v18 = vadd.f32 %v840_v16, %v751_v15  ;;  %v665_v24 = vadd.f32 %v664_v19, %v575_v17 }
 0x174   : > { %v890_v20 = vpack.c.bf16 %v841_v18, %v663_v14 }
 0x176   : > { %922 = vst [vmem:[%s1674_s17 + $0xa0] sm:$0xff] %v890_v20 }
 0x178   : > { %v753_v21 = vpop.f32.mrf.mxu2  ;;  %v578_v23 = vpop.f32.mrf.mxu0 }
 0x179   : > { %v842_v22 = vpop.f32.mrf.mxu3  ;;  %v667_v26 = vpop.f32.mrf.mxu1 }
 0x17a   : > { %v843_v25 = vadd.f32 %v842_v22, %v753_v21  ;;  %v668_v28 = vadd.f32 %v667_v26, %v578_v23 }
 0x17c   : > { %v891_v27 = vpack.c.bf16 %v843_v25, %v665_v24 }
 0x17e   : > { %923 = vst [vmem:[%s1674_s17 + $0xa8] sm:$0xff] %v891_v27 }
 0x180   : > { %v756_v29 = vpop.f32.mrf.mxu2  ;;  %v580_v31 = vpop.f32.mrf.mxu0 }
 0x181   : > { %v845_v30 = vpop.f32.mrf.mxu3  ;;  %v669_v33 = vpop.f32.mrf.mxu1 }
 0x182   : > { %v846_v32 = vadd.f32 %v845_v30, %v756_v29  ;;  %v670_v38 = vadd.f32 %v669_v33, %v580_v31 }
 0x184   : > { %v892_v34 = vpack.c.bf16 %v846_v32, %v668_v28 }
 0x186   : > { %924 = vst [vmem:[%s1674_s17 + $0xb0] sm:$0xff] %v892_v34 }
 0x188   : > { %v758_v35 = vpop.f32.mrf.mxu2  ;;  %v583_v37 = vpop.f32.mrf.mxu0 }
 0x189   : > { %v847_v36 = vpop.f32.mrf.mxu3  ;;  %v672_v40 = vpop.f32.mrf.mxu1 }
 0x18a   : > { %v848_v39 = vadd.f32 %v847_v36, %v758_v35  ;;  %v673_v42 = vadd.f32 %v672_v40, %v583_v37 }
 0x18c   : > { %v893_v41 = vpack.c.bf16 %v848_v39, %v670_v38 }
 0x18e   : > { %925 = vst [vmem:[%s1674_s17 + $0xb8] sm:$0xff] %v893_v41 }
 0x190   : > { %v761_v43 = vpop.f32.mrf.mxu2  ;;  %v585_v45 = vpop.f32.mrf.mxu0 }
 0x191   : > { %v850_v44 = vpop.f32.mrf.mxu3  ;;  %v674_v47 = vpop.f32.mrf.mxu1 }
 0x192   : > { %v851_v46 = vadd.f32 %v850_v44, %v761_v43  ;;  %v675_v52 = vadd.f32 %v674_v47, %v585_v45 }
 0x194   : > { %v894_v48 = vpack.c.bf16 %v851_v46, %v673_v42 }
 0x196   : > { %926 = vst [vmem:[%s1674_s17 + $0xc0] sm:$0xff] %v894_v48 }
 0x198   : > { %v763_v49 = vpop.f32.mrf.mxu2  ;;  %v588_v51 = vpop.f32.mrf.mxu0 }
 0x199   : > { %v852_v50 = vpop.f32.mrf.mxu3  ;;  %v677_v54 = vpop.f32.mrf.mxu1 }
 0x19a   : > { %v853_v53 = vadd.f32 %v852_v50, %v763_v49  ;;  %v678_v56 = vadd.f32 %v677_v54, %v588_v51 }
 0x19c   : > { %v895_v55 = vpack.c.bf16 %v853_v53, %v675_v52 }
 0x19e   : > { %927 = vst [vmem:[%s1674_s17 + $0xc8] sm:$0xff] %v895_v55 }
 0x1a0   : > { %v766_v57 = vpop.f32.mrf.mxu2  ;;  %v590_v59 = vpop.f32.mrf.mxu0 }
 0x1a1   : > { %v855_v58 = vpop.f32.mrf.mxu3  ;;  %v679_v61 = vpop.f32.mrf.mxu1 }
 0x1a2   : > { %v856_v60 = vadd.f32 %v855_v58, %v766_v57  ;;  %v680_v2 = vadd.f32 %v679_v61, %v590_v59 }
 0x1a4   : > { %v896_v62 = vpack.c.bf16 %v856_v60, %v678_v56 }
 0x1a6   : > { %928 = vst [vmem:[%s1674_s17 + $0xd0] sm:$0xff] %v896_v62 }
 0x1a8   : > { %v768_v63 = vpop.f32.mrf.mxu2  ;;  %v593_v1 = vpop.f32.mrf.mxu0 }
 0x1a9   : > { %v857_v0 = vpop.f32.mrf.mxu3  ;;  %v682_v4 = vpop.f32.mrf.mxu1 }
 0x1aa   : > { %v858_v3 = vadd.f32 %v857_v0, %v768_v63  ;;  %v683_v6 = vadd.f32 %v682_v4, %v593_v1 }
 0x1ac   : > { %v897_v5 = vpack.c.bf16 %v858_v3, %v680_v2 }
 0x1ae   : > { %929 = vst [vmem:[%s1674_s17 + $0xd8] sm:$0xff] %v897_v5 }
 0x1b0   : > { %v771_v7 = vpop.f32.mrf.mxu2  ;;  %v595_v10 = vpop.f32.mrf.mxu0 }
 0x1b1   : > { %v860_v8 = vpop.f32.mrf.mxu3  ;;  %v684_v11 = vpop.f32.mrf.mxu1 }
 0x1b2   : > { %v861_v9 = vadd.f32 %v860_v8, %v771_v7  ;;  %v685_v15 = vadd.f32 %v684_v11, %v595_v10 }
 0x1b4   : > { %v898_v12 = vpack.c.bf16 %v861_v9, %v683_v6 }
 0x1b6   : > { %930 = vst [vmem:[%s1674_s17 + $0xe0] sm:$0xff] %v898_v12 }
 0x1b8   : > { %v773_v13 = vpop.f32.mrf.mxu2  ;;  %v598_v18 = vpop.f32.mrf.mxu0 }
 0x1b9   : > { %v862_v14 = vpop.f32.mrf.mxu3  ;;  %v687_v19 = vpop.f32.mrf.mxu1 }
 0x1ba   : > { %v863_v16 = vadd.f32 %v862_v14, %v773_v13  ;;  %v688_v20 = vadd.f32 %v687_v19, %v598_v18 }
 0x1bc   : > { %v899_v17 = vpack.c.bf16 %v863_v16, %v685_v15 }
 0x1be   : > { %931 = vst [vmem:[%s1674_s17 + $0xe8] sm:$0xff] %v899_v17 }
 0x1c0   : > { %v776_v21 = vpop.f32.mrf.mxu2  ;;  %v600_v25 = vpop.f32.mrf.mxu0 }
 0x1c1   : > { %v865_v22 = vpop.f32.mrf.mxu3  ;;  %v689_v26 = vpop.f32.mrf.mxu1 }
 0x1c2   : > { %v866_v23 = vadd.f32 %v865_v22, %v776_v21  ;;  %v690_v29 = vadd.f32 %v689_v26, %v600_v25 }
 0x1c4   : > { %v900_v24 = vpack.c.bf16 %v866_v23, %v688_v20 }
 0x1c6   : > { %932 = vst [vmem:[%s1674_s17 + $0xf0] sm:$0xff] %v900_v24 }
 0x1c8   : > { %v778_v27 = vpop.f32.mrf.mxu2 }
 0x1c9   : > { %v867_v28 = vpop.f32.mrf.mxu3 }
 0x1ca   : > { %v868_v30 = vadd.f32 %v867_v28, %v778_v27 }
 0x1cc   : > { %v901_v31 = vpack.c.bf16 %v868_v30, %v690_v29 }
 0x1ce   : > { %933 = vst [vmem:[%s1674_s17 + $0xf8] sm:$0xff] %v901_v31 }
 0x1cf   : > { %1406 = shalt.err (!%p1403_p0)
}
 0x1d0   : > { %s1472_s30 = smov 128   ;;  %s1473_s3 = smov 256  }
 0x1d1   : > { %s1474_s6 = smov 8  }
 0x1d2   : > { %1245 = dma.vmem_to_hbm [thread:$0]  (%p1571_p5), %s951_s16, 4096, %s953_s21, %s935_s12, %s1472_s30, %s1473_s3, %s1474_s6  }
 0x1d3 PF: > { %s967_s27 = sand.u32 1, %s1445_s9   ;;  %p1256_p3 = pnand %p1064_p11, %p1539_p6 }
 0x1d4   : > { %s968_s17 = scalar_lea.sflag [#allocation4], %s967_s27 }
 0x1d5   : > { %p1257_p7 = pneg %p1256_p3 }
 0x1d7   : > { %1440 = dma.done.wait (%p1257_p7), %s968_s17, 4096  }
 0x1d8   : > { %1442 = vsyncadd (%p1257_p7), %s968_s17, 4294963200  ;;  %s19_s14 = sadd.s32 1, %s1465_s14   ;;  %s1759_s9 = smov %s1449_s10 }
 0x1d9   : > { %p16_p9 = scmp.ge.s32.totalorder %s19_s14, 4   ;;  %s1760_s10 = smov %s1453_s11 }
 0x1da   : > { %s1761_s11 = smov %s1580_s8  ;;  %s1762_s12 = smov %s1461_s13 }
 0x1db   : > { %s1763_s13 = smov %s1765_s29  ;;  %18 = sbr.rel (!%p16_p9) target bundleno = 7 (0x7), region = 79 }
 0x1e0   :  { %974 = vsyncpa [#allocation3], 1 }
 0x1e1   :  { %976 = vsyncpa [#allocation3 + $0x1], 1 }
 0x1e2   :  { %977 = vsyncpa [#allocation6], 1 }
 0x1e3   :  { %979 = vsyncpa [#allocation6 + $0x1], 1 }
 0x1e4   :  { %980 = vsyncpa [#allocation4], 1 }
 0x1e5   :  { %982 = vsyncpa [#allocation4 + $0x1], 1 }

</bundles_post_ra>
